<compile_context>
chip_gen: v7x
topology: tpu7x:2x2x1
jax: 0.10.0
libtpu: 0.0.40
codegen_flags: <defaults>
</compile_context>

<pallas_src>
import jax
import jax.numpy as jnp
from jax.experimental import pallas as pl
from jax.experimental.pallas import tpu as pltpu

# Fixed (non-trainable) kernel from the module's __init__ — embedded as constants.
KERNEL_5X5 = (
    (0.0, 0.0, -1.0, 0.0, 0.0),
    (0.0, 2.0,  2.0, 2.0, 0.0),
    (-1.0, 2.0, 4.9, 2.0, -1.0),
    (0.0, 2.0,  2.0, 2.0, 0.0),
    (0.0, 0.0, -1.0, 0.0, 0.0),
)


def _lamplas2_kernel(xm_ref, xh_ref, o_ref):
    """One (batch, row-tile) program over all 3 channels.

    xm_ref: (3, TH, W_pad)   main input rows of this tile
    xh_ref: (3, 8,  W_pad)   4-row bottom halo (rounded up to 8 rows)
    o_ref : (3, TH, Wo_pad)  lane-dense output tile
    """
    TH = xm_ref.shape[1]
    Wo = o_ref.shape[-1]

    # Single load of the working set; every shift below is a value slice
    # (register/VMEM-level), not a fresh ref read.
    x = jnp.concatenate(
        [xm_ref[...].astype(jnp.float32), xh_ref[...].astype(jnp.float32)],
        axis=1,
    )  # (3, TH + 8, W_pad)

    # Factored stencil: 3 shared horizontal passes + 5 vertical combines.
    #   rows 0,4 : [ 0, 0,-1, 0, 0] -> h0
    #   rows 1,3 : [ 0, 2, 2, 2, 0] -> h1
    #   row  2   : [-1, 2,4.9,2,-1] -> h2 = h1 + 2.9*center - left2 - right2
    xc = x[:, :, 2:2 + Wo]
    h1 = 2.0 * (x[:, :, 1:1 + Wo] + xc + x[:, :, 3:3 + Wo])
    h2 = h1 + 2.9 * xc - x[:, :, 0:Wo] - x[:, :, 4:4 + Wo]
    h0 = -xc

    # out[i] = h0[i] + h1[i+1] + h2[i+2] + h1[i+3] + h0[i+4]
    out = (h0[:, 0:TH] + h1[:, 1:TH + 1] + h2[:, 2:TH + 2]
           + h1[:, 3:TH + 3] + h0[:, 4:TH + 4])
    o_ref[...] = out.astype(o_ref.dtype)


def _vmem_need_bytes(TH, W_pad, Wo_pad, itemsize):
    # Double-buffered DMA blocks: main input, halo input, output.
    io = 2 * 3 * itemsize * (TH * W_pad + 8 * W_pad + TH * Wo_pad)
    # In-kernel f32 temporaries: x, h0..h2, out value.
    tmp = 3 * 4 * ((TH + 8) * W_pad + 3 * (TH + 8) * Wo_pad + TH * Wo_pad)
    return io + tmp


def lamplas2(x, *, row_tile=None):
    """x: (N, C>=3, H, W) -> (N, 3, H-4, W-4), matching the PyTorch module."""
    N, C, H, W = x.shape
    assert C >= 3, "lamplas2 uses the first 3 channels"
    assert H >= 5 and W >= 5, "valid 5x5 conv needs H, W >= 5"
    Ho, Wo = H - 4, W - 4
    itemsize = jnp.dtype(x.dtype).itemsize

    # Lane-dense output width (multiple of 128); input width adds 4 halo cols.
    Wo_pad = max(128, -(-Wo // 128) * 128)
    W_pad = Wo_pad + 4

    # Row tile (multiple of 8) sized so blocks + temporaries fit a conservative
    # VMEM budget (safe for v7x's 32 MiB scoped default).
    Ho_ceil8 = -(-Ho // 8) * 8
    if row_tile is None:
        row_tile = 256
        while row_tile > 8 and _vmem_need_bytes(row_tile, W_pad, Wo_pad, itemsize) > (20 << 20):
            row_tile //= 2
    else:
        row_tile = max(8, -(-row_tile // 8) * 8)
    TH = min(row_tile, Ho_ceil8)
    R = -(-Ho // TH)
    Ho_pad = R * TH
    H_pad = Ho_pad + 8  # last tile's halo fetch reads rows [Ho_pad, Ho_pad + 8)

    xp = jnp.pad(x[:, :3], ((0, 0), (0, 0), (0, H_pad - H), (0, W_pad - W)))

    th8 = TH // 8
    vmem_limit = int(min(max(_vmem_need_bytes(TH, W_pad, Wo_pad, itemsize) + (8 << 20),
                             16 << 20), 48 << 20))
    cost = pl.CostEstimate(
        flops=int(26 * N * 3 * Ho * Wo),
        transcendentals=0,
        bytes_accessed=int(itemsize * N * 3 * (H_pad * W_pad + Ho_pad * Wo_pad)),
    )

    out_padded = pl.pallas_call(
        _lamplas2_kernel,
        out_shape=jax.ShapeDtypeStruct((N, 3, Ho_pad, Wo_pad), x.dtype),
        grid=(N, R),
        in_specs=[
            # Main rows of this tile.
            pl.BlockSpec((pl.Squeezed(), 3, TH, W_pad),
                         lambda n, r: (n, 0, r, 0)),
            # 8-row halo block directly below the tile (same array, 2nd view).
            pl.BlockSpec((pl.Squeezed(), 3, 8, W_pad),
                         lambda n, r: (n, 0, (r + 1) * th8, 0)),
        ],
        out_specs=pl.BlockSpec((pl.Squeezed(), 3, TH, Wo_pad),
                               lambda n, r: (n, 0, r, 0)),
        compiler_params=pltpu.CompilerParams(
            dimension_semantics=("parallel", "parallel"),
            vmem_limit_bytes=vmem_limit,
        ),
        cost_estimate=cost,
    )(xp, xp)

    return out_padded[:, :, :Ho, :Wo]


def _reference(x):
    # Pure-JAX reference (cross-correlation, valid) for correctness checking.
    N, C, H, W = x.shape
    Ho, Wo = H - 4, W - 4
    out = jnp.zeros((N, 3, Ho, Wo), jnp.float32)
    for ki in range(5):
        for kj in range(5):
            w = KERNEL_5X5[ki][kj]
            if w != 0.0:
                out = out + w * x[:, :3, ki:ki + Ho, kj:kj + Wo]
    return out.astype(x.dtype)


if __name__ == "__main__":
    key = jax.random.PRNGKey(0)
    x = jax.random.normal(key, (2, 4, 16, 16), dtype=jnp.float32)

    out = jax.block_until_ready(lamplas2(x))
    ref = _reference(x)
    assert out.shape == (2, 3, 12, 12), out.shape
    assert jnp.allclose(out, ref, atol=1e-3, rtol=1e-4), "mismatch vs reference"

    # Exercise the multi-row-tile + halo path as well (still small shapes).
    x2 = jax.random.normal(jax.random.PRNGKey(0), (1, 3, 44, 24), dtype=jnp.float32)
    out2 = jax.block_until_ready(lamplas2(x2, row_tile=16))
    ref2 = _reference(x2)
    assert out2.shape == (1, 3, 40, 20), out2.shape
    assert jnp.allclose(out2, ref2, atol=1e-3, rtol=1e-4), "mismatch (tiled path)"

    print("KERNEL_OK")
</pallas_src>

<mosaic_0001>
module attributes {stable_mosaic.version = 11 : i64} {
  func.func @_lamplas2_kernel(%arg0: i32, %arg1: i32, %arg2: memref<1x3x16x132xf32, #tpu.memory_space<vmem>>, %arg3: memref<1x3x8x132xf32, #tpu.memory_space<vmem>>, %arg4: memref<1x3x16x128xf32, #tpu.memory_space<vmem>>) attributes {dimension_semantics = [#tpu.dimension_semantics<parallel>, #tpu.dimension_semantics<parallel>], iteration_bounds = array<i64: 2, 1>, scalar_prefetch = 0 : i64, scratch_operands = 0 : i64, tpu.core_type = #tpu.core_type<tc>, window_params = [{transform_indices = @transform_0, window_bounds = array<i64: 1, 3, 16, 132>}, {transform_indices = @transform_1, window_bounds = array<i64: 1, 3, 8, 132>}, {transform_indices = @transform_2, window_bounds = array<i64: 1, 3, 16, 128>}]} {
    %c0 = arith.constant 0 : index
    %c0_0 = arith.constant 0 : index
    %c0_1 = arith.constant 0 : index
    %c0_2 = arith.constant 0 : index
    %0 = vector.load %arg2[%c0, %c0_0, %c0_1, %c0_2] : memref<1x3x16x132xf32, #tpu.memory_space<vmem>>, vector<1x3x16x132xf32>
    %1 = vector.shape_cast %0 : vector<1x3x16x132xf32> to vector<3x16x132xf32>
    %c0_3 = arith.constant 0 : index
    %c0_4 = arith.constant 0 : index
    %c0_5 = arith.constant 0 : index
    %c0_6 = arith.constant 0 : index
    %2 = vector.load %arg3[%c0_3, %c0_4, %c0_5, %c0_6] : memref<1x3x8x132xf32, #tpu.memory_space<vmem>>, vector<1x3x8x132xf32>
    %3 = vector.shape_cast %2 : vector<1x3x8x132xf32> to vector<3x8x132xf32>
    %4 = tpu.concatenate %1, %3 in 1 : vector<3x16x132xf32>, vector<3x8x132xf32> -> vector<3x24x132xf32>
    %5 = vector.extract_strided_slice %4 {offsets = [0, 0, 2], sizes = [3, 24, 128], strides = [1, 1, 1]} : vector<3x24x132xf32> to vector<3x24x128xf32>
    %6 = vector.extract_strided_slice %4 {offsets = [0, 0, 1], sizes = [3, 24, 128], strides = [1, 1, 1]} : vector<3x24x132xf32> to vector<3x24x128xf32>
    %7 = arith.addf %6, %5 : vector<3x24x128xf32>
    %8 = vector.extract_strided_slice %4 {offsets = [0, 0, 3], sizes = [3, 24, 128], strides = [1, 1, 1]} : vector<3x24x132xf32> to vector<3x24x128xf32>
    %9 = arith.addf %7, %8 : vector<3x24x128xf32>
    %cst = arith.constant 2.000000e+00 : f32
    %10 = vector.broadcast %cst : f32 to vector<3x24x128xf32>
    %11 = arith.mulf %10, %9 : vector<3x24x128xf32>
    %cst_7 = arith.constant 2.900000e+00 : f32
    %12 = vector.broadcast %cst_7 : f32 to vector<3x24x128xf32>
    %13 = arith.mulf %12, %5 : vector<3x24x128xf32>
    %14 = arith.addf %11, %13 : vector<3x24x128xf32>
    %15 = vector.extract_strided_slice %4 {offsets = [0, 0, 0], sizes = [3, 24, 128], strides = [1, 1, 1]} : vector<3x24x132xf32> to vector<3x24x128xf32>
    %16 = arith.subf %14, %15 : vector<3x24x128xf32>
    %17 = vector.extract_strided_slice %4 {offsets = [0, 0, 4], sizes = [3, 24, 128], strides = [1, 1, 1]} : vector<3x24x132xf32> to vector<3x24x128xf32>
    %18 = arith.subf %16, %17 : vector<3x24x128xf32>
    %cst_8 = arith.constant 0.000000e+00 : f32
    %19 = vector.broadcast %cst_8 : f32 to vector<3x24x128xf32>
    %20 = arith.subf %19, %5 : vector<3x24x128xf32>
    %21 = vector.extract_strided_slice %20 {offsets = [0, 0, 0], sizes = [3, 16, 128], strides = [1, 1, 1]} : vector<3x24x128xf32> to vector<3x16x128xf32>
    %22 = vector.extract_strided_slice %11 {offsets = [0, 1, 0], sizes = [3, 16, 128], strides = [1, 1, 1]} : vector<3x24x128xf32> to vector<3x16x128xf32>
    %23 = arith.addf %21, %22 : vector<3x16x128xf32>
    %24 = vector.extract_strided_slice %18 {offsets = [0, 2, 0], sizes = [3, 16, 128], strides = [1, 1, 1]} : vector<3x24x128xf32> to vector<3x16x128xf32>
    %25 = arith.addf %23, %24 : vector<3x16x128xf32>
    %26 = vector.extract_strided_slice %11 {offsets = [0, 3, 0], sizes = [3, 16, 128], strides = [1, 1, 1]} : vector<3x24x128xf32> to vector<3x16x128xf32>
    %27 = arith.addf %25, %26 : vector<3x16x128xf32>
    %28 = vector.extract_strided_slice %20 {offsets = [0, 4, 0], sizes = [3, 16, 128], strides = [1, 1, 1]} : vector<3x24x128xf32> to vector<3x16x128xf32>
    %29 = arith.addf %27, %28 : vector<3x16x128xf32>
    %c0_9 = arith.constant 0 : index
    %c0_10 = arith.constant 0 : index
    %c0_11 = arith.constant 0 : index
    %c0_12 = arith.constant 0 : index
    %30 = vector.load %arg4[%c0_9, %c0_10, %c0_11, %c0_12] : memref<1x3x16x128xf32, #tpu.memory_space<vmem>>, vector<1x3x16x128xf32>
    %31 = vector.shape_cast %30 : vector<1x3x16x128xf32> to vector<3x16x128xf32>
    %32 = vector.shape_cast %29 : vector<3x16x128xf32> to vector<1x3x16x128xf32>
    tpu.vector_store %arg4[%c0_9, %c0_10, %c0_11, %c0_12], %32 {strides = array<i32>} : memref<1x3x16x128xf32, #tpu.memory_space<vmem>>, vector<1x3x16x128xf32>,
    return
  }
  func.func @transform_0(%arg0: i32, %arg1: i32) -> (i32, i32, i32, i32) {
    %c0_i32 = arith.constant 0 : i32
    %c0_i32_0 = arith.constant 0 : i32
    %c0_i32_1 = arith.constant 0 : i32
    return %arg0, %c0_i32, %arg1, %c0_i32_0 : i32, i32, i32, i32
  }
  func.func @transform_1(%arg0: i32, %arg1: i32) -> (i32, i32, i32, i32) {
    %c1_i32 = arith.constant 1 : i32
    %0 = arith.addi %arg1, %c1_i32 : i32
    %c2_i32 = arith.constant 2 : i32
    %1 = arith.muli %0, %c2_i32 : i32
    %c0_i32 = arith.constant 0 : i32
    %c0_i32_0 = arith.constant 0 : i32
    %c0_i32_1 = arith.constant 0 : i32
    return %arg0, %c0_i32, %1, %c0_i32_0 : i32, i32, i32, i32
  }
  func.func @transform_2(%arg0: i32, %arg1: i32) -> (i32, i32, i32, i32) {
    %c0_i32 = arith.constant 0 : i32
    %c0_i32_0 = arith.constant 0 : i32
    %c0_i32_1 = arith.constant 0 : i32
    return %arg0, %c0_i32, %arg1, %c0_i32_0 : i32, i32, i32, i32
  }
}

</mosaic_0001>

<bundles_post_ra>
// kernel: tpu_custom_call.1
= control target key start
LH: loop header
LB: loop body
LE: loop exit
PB: predicated region body
PF: predicated region fallthrough
CT: control target
= control target key end

     0   :  { %7 = vsyncpa [#allocation3], 0  ;;  %s2490_s0 = inlined_call_operand.hbm [shape: f32[2,3,24,132], index: 0, kind: input, shape index: {}]   ;;  %s2491_s1 = inlined_call_operand.hbm [shape: f32[2,3,24,132], index: 1, kind: input, shape index: {}]   ;;  %s2492_s2 = inlined_call_operand.hbm [shape: f32[2,3,16,128], index: 2, kind: output, shape index: {}]  }
   0x1   :  { %9 = vsyncpa [#allocation3 + $0x1], 0 }
   0x2   :  { %10 = vsyncpa [#allocation6], 0 }
   0x3   :  { %12 = vsyncpa [#allocation6 + $0x1], 0 }
   0x4   :  { %13 = vsyncpa [#allocation4], 0 }
   0x5   :  { %15 = vsyncpa [#allocation4 + $0x1], 0  ;;  %s1556_s9 = smov 0   ;;  %s1558_s10 = smov 0  }
   0x6   :  { %s1560_s11 = smov 0   ;;  %s1562_s12 = smov 0  }
   0x7   :  { %s1564_s13 = smov 0   ;;  %s1566_s14 = smov 0  }
   0x8 LB: > { %s1302_s15 = sadd.s32 4294967295, %s1522_s14   ;;  %s1303_s16 = sadd.s32 4294967294, %s1522_s14   ;;  %s1522_s14 = sphi %s1566_s14, %s21_s14   ;;  %s1518_s13 = sphi %s1564_s13, %s2565_s13   ;;  %s1514_s12 = sphi %s1562_s12, %s2564_s12   ;;  %s1510_s11 = sphi %s1560_s11, %s2563_s11   ;;  %s1506_s10 = sphi %s1558_s10, %s2562_s10   ;;  %s1502_s9 = sphi %s1556_s9, %s2561_s9  }
   0x9   : > { %s33_s17 = sadd.s32 1, %s1518_s13  ;;  %s42_s18 = sadd.s32 1, %s1510_s11 }
   0xa   : > { %p35_p0 = scmp.ge.s32.totalorder %s33_s17, 2  ;;  %p49_p1 = scmp.ne.s32.totalorder %s1510_s11, %s1506_s10 }
   0xb   : > { %p50_p2 = scmp.eq.s32.totalorder %s1522_s14, 0  ;;  %p55_p3 = scmp.ne.s32.totalorder %s1506_s10, %s1502_s9 }
   0xc   : > { %s2567_s17 = smov (%p35_p0, %s33_s17), 0  ;;  %p56_p5 = scmp.eq.s32.totalorder %s1302_s15, 0 }
   0xd   : > { %p1597_p4 = por %p50_p2, %p49_p1  ;;  %s37_s20 = ssub.s32 %s1518_s13, %s2567_s17 }
   0xe   : > { %p113_p6 = scmp.eq.s32.totalorder %s1302_s15, 1  ;;  %p40_p7 = scmp.eq.s32.totalorder %s37_s20, 0 }
   0xf   : > { %p1603_p8 = por %p56_p5, %p55_p3  ;;  %p119_p10 = scmp.eq.s32.totalorder %s1303_s16, 1 }
  0x10   : > { %p1607_p9 = por %p113_p6, %p49_p1  ;;  %p2493_p12 = scmp.ge.s32.totalorder %s1522_s14, 2 }
  0x11   : > { %s1612_s23 = scalar_select %p40_p7, %s1510_s11, %s42_s18  }
  0x12   : > { %s2514_s22 = scalar_select %p1607_p9, 1, 0 }
  0x13   : > { %p1614_p11 = por %p119_p10, %p55_p3  ;;  %135 = sbr.rel (%p2493_p12) target bundleno = 66 (0x42), region = 16 }
  0x15   : > { %s2515_s24 = scalar_select %p1614_p11, 1, 0 }
  0x1a   : > { %s1622_s25 = sand.u32 1, %s1510_s11   ;;  %s1315_s26 = smul.u32 2304, %s1518_s13 }
  0x1b   : > { %s1314_s27 = smul.u32 96, %s1622_s25  ;;  %s1524_s28 = smov 768  }
  0x1c   : > { %1321 = sst [smem:[#allocation9]] (%p1597_p4), %s1524_s28  ;;  %s158_s4 = scalar_lea.hbm %s2490_s0, %s1315_s26 }
  0x1d   : > { %s1320_s29 = scalar_select %p1597_p4, [#allocation0], [#allocation10] }
  0x1e   : > { %s143_s6 = scalar_lea.vmem [#allocation2], %s1314_s27  ;;  %s1525_s8 = smov 512  }
  0x1f   : > { %s165_s5 = sld [smem:[%s1320_s29]]   ;;  %s173_s7 = sshll.u32 %s143_s6, 4  ;;  %s174_s7 = int_to_ptr.vmem [resolvable:$true] %s173_s7 }
  0x20   : > { %1322 = sst [smem:[#allocation9 + $0x1]] (%p1597_p4), %s1525_s8  ;;  %s1526_s15 = smov 2  }
  0x21   : > { %1323 = sst [smem:[#allocation9 + $0x2]] (%p1597_p4), %s1526_s15  ;;  %s1527_s16 = smov 256  }
  0x22   : > { %1324 = sst [smem:[#allocation9 + $0x3]] (%p1597_p4), %s1527_s16  ;;  %s1528_s18 = smov 16  }
  0x23   : > { %1325 = sst [smem:[#allocation9 + $0x4]] (%p1597_p4), %s1527_s16  ;;  %s140_s27 = scalar_lea.sflag [#allocation3], %s1622_s25 }
  0x24   : > { %1326 = sst [smem:[#allocation9 + $0x5]] (%p1597_p4), %s1528_s18  ;;  %s1529_s29 = smov [#allocation8]  }
  0x25   : > { %s1307_s20 = sshll.u32 %s165_s5, 26  ;;  %s1316_s30 = smul.u32 48, %s1622_s25 }
  0x26   : > { %s1308_s28 = sadd.s32 134217728, %s1307_s20  ;;  %s1233_s8 = scalar_lea.hbm %s2491_s1, %s1315_s26 }
  0x27   : > { %1327 = dma.general (%p1597_p4), %s158_s4, 1536, %s174_s7, %s140_s27, %s1529_s29, [#allocation9], %s1308_s28, 0  }
  0x28   : > { %s1650_s15 = scalar_lea.hbm %s1233_s8, 512  ;;  %s200_s16 = scalar_lea.vmem [#allocation5], %s1316_s30 }
  0x29   : > { %s211_s5 = sshll.u32 %s200_s16, 4  ;;  %s197_s18 = scalar_lea.sflag [#allocation6], %s1622_s25  ;;  %s1652_s5 = int_to_ptr.vmem [resolvable:$true] %s211_s5 }
  0x2a   : > { %s1435_s20 = scalar_lea.hbm %s1233_s8, 1280  ;;  %s1411_s28 = scalar_lea.hbm %s2491_s1, 4608 }
  0x2b   : > { %p1408_p13 = scmp.ne.s32.totalorder %s1650_s15, %s1435_s20  ;;  %p1412_p2 = scmp.lt.u32.totalorder %s1650_s15, %s2491_s1 }
  0x2c   : > { %p1413_p3 = scmp.lt.u32.totalorder %s1411_s28, %s1435_s20  ;;  %p1415_p6 = scmp.lt.u32.totalorder %s1435_s20, %s1650_s15 }
  0x2d   : > { %p1409_p0 = pnand %p1408_p13, %p1597_p4 }
  0x2e   : > { %p1414_p5 = por %p1413_p3, %p1412_p2 }
  0x2f   : > { %p1410_p1 = pneg %p1409_p0 }
  0x30   : > { %p1416_p7 = por %p1415_p6, %p1414_p5 }
  0x32   : > { %p1417_p10 = pnand %p1416_p7, %p1410_p1 }
  0x34   : > { %1420 = shalt.err (!%p1417_p10)
}
  0x35   : > { %s1421_s29 = scalar_lea.vmem %s1652_s5, 768  ;;  %s1530_s30 = smov [#allocation5]  }
  0x36   : > { %p1422_p13 = scmp.ne.s32.totalorder %s1652_s5, %s1421_s29  ;;  %s1425_s3 = sshll.u32 %s1530_s30, 4  ;;  %s1426_s3 = int_to_ptr.vmem [resolvable:$false] %s1425_s3 }
  0x37   : > { %s1427_s6 = scalar_lea.vmem %s1426_s3, 1536  ;;  %p1428_p11 = scmp.lt.s32.totalorder %s1652_s5, %s1426_s3 }
  0x38   : > { %p1423_p0 = pnand %p1422_p13, %p1597_p4  ;;  %p1429_p9 = scmp.lt.s32.totalorder %s1427_s6, %s1421_s29 }
  0x3a   : > { %p1424_p12 = pneg %p1423_p0  ;;  %p1430_p2 = por %p1429_p9, %p1428_p11 }
  0x3c   : > { %p1431_p3 = pnand %p1430_p2, %p1424_p12 }
  0x3e   : > { %1434 = shalt.err (!%p1431_p3)
}
  0x3f   : > { %s1531_s8 = smov 768   ;;  %s1532_s16 = smov 256  }
  0x40   : > { %s1533_s20 = smov 16  }
  0x41   : > { %1328 = dma.hbm_to_vmem [thread:$0]  (%p1597_p4), %s1650_s15, 768, %s1652_s5, %s197_s18, %s1531_s8, %s1532_s16, %s1533_s20  }
  0x42 PF: > { %p1310_p1 = scmp.ge.s32.totalorder %s1522_s14, 1  ;;  %p219_p5 = scmp.lt.s32.totalorder %s1522_s14, 3 }
  0x44   : > { %p220_p6 = pnand %p1310_p1, %p219_p5 }
  0x46   : > { %223 = sbr.rel (%p220_p6) target bundleno = 643 (0x283), region = 28 }
  0x4d   : > { %s1680_s4 = sand.u32 1, %s1506_s10  }
  0x4e   : > { %s1317_s7 = smul.u32 96, %s1680_s4  ;;  %s226_s28 = scalar_lea.sflag [#allocation3], %s1680_s4 }
  0x50   : > { %s1684_s26 = scalar_lea.vmem [#allocation2], %s1317_s7 }
  0x51   : > { %1489 = dma.done.wait (%p1603_p8), %s226_s28, 1536  }
  0x52   : > { %1491 = vsyncadd (%p1603_p8), %s226_s28, 4294965760  ;;  %s1318_s19 = smul.u32 48, %s1680_s4  ;;  %s235_s25 = scalar_lea.sflag [#allocation6], %s1680_s4 }
  0x54   : > { %s1694_s15 = scalar_lea.vmem [#allocation5], %s1318_s19 }
  0x55   : > { %1493 = dma.done.wait (%p1603_p8), %s235_s25, 768  }
  0x56   : > { %1495 = vsyncadd (%p1603_p8), %s235_s25, 4294966528  ;;  %v1701_v0 = vld [vmem:[%s1684_s26 + $0x10] sm:$0xff]  ;;  %v1704_v1 = vld [vmem:[%s1684_s26] sm:$0xff]  ;;  %s1534_s5 = smov 127   ;;  %s1535_s21 = smov 126   ;;  %vm345_vm0 = vcmask 1039360  }
  0x57   : > { %2516 = vst [vmem:[#allocation14_spill] sm:$0xff] %v1701_v0  ;;  %2517 = vst [vmem:[#allocation15_spill] sm:$0xff] %v1704_v1  ;;  %313 = vrot.lane.b32.xlu1 %v1701_v0, %s1534_s5  ;;  %309 = vrot.lane.b32.xlu0 %v1704_v1, %s1534_s5  ;;  %v1711_v2 = vld [vmem:[%s1684_s26 + $0x18] sm:$0xff]  ;;  %v1714_v3 = vld [vmem:[%s1684_s26 + $0x8] sm:$0xff]  ;;  %v491_v19 = vmul.f32 2.9, %v1704_v1 }
  0x58   : > { %2518 = vst [vmem:[#allocation16_spill] sm:$0xff] %v1711_v2  ;;  %2519 = vst [vmem:[#allocation17_spill] sm:$0xff] %v1714_v3  ;;  %v1721_v4 = vld [vmem:[%s1694_s15 + $0x8] sm:$0xff]  ;;  %v1724_v5 = vld [vmem:[%s1694_s15] sm:$0xff]  ;;  %v492_v18 = vmul.f32 2.9, %v1714_v3 }
  0x59   : > { %2520 = vst [vmem:[#allocation18_spill] sm:$0xff] %v1724_v5  ;;  %v1731_v6 = vld [vmem:[%s1684_s26 + $0x28] sm:$0xff]  ;;  %v1734_v7 = vld [vmem:[%s1684_s26 + $0x20] sm:$0xff]  ;;  %v1741_v8 = vld [vmem:[%s1684_s26 + $0x38] sm:$0xff]  ;;  %v494_v20 = vmul.f32 2.9, %v1711_v2 }
  0x5a   : > { %2521 = vst [vmem:[#allocation19_spill] sm:$0xff] %v1731_v6  ;;  %2522 = vst [vmem:[#allocation20_spill] sm:$0xff] %v1734_v7  ;;  %v1744_v9 = vld [vmem:[%s1684_s26 + $0x30] sm:$0xff]  ;;  %v1751_v10 = vld [vmem:[%s1694_s15 + $0x18] sm:$0xff]  ;;  %v493_v21 = vmul.f32 2.9, %v1701_v0 }
  0x5b   : > { %315 = vrot.lane.b32.xlu1 %v1711_v2, %s1534_s5  ;;  %311 = vrot.lane.b32.xlu0 %v1714_v3, %s1534_s5  ;;  %2523 = vst [vmem:[#allocation21_spill] sm:$0xff] %v1741_v8  ;;  %2524 = vst [vmem:[#allocation22_spill] sm:$0xff] %v1744_v9  ;;  %v1754_v11 = vld [vmem:[%s1694_s15 + $0x10] sm:$0xff]  ;;  %v1761_v12 = vld [vmem:[%s1684_s26 + $0x48] sm:$0xff]  ;;  %v496_v22 = vmul.f32 2.9, %v1721_v4 }
  0x5c   : > { %2525 = vst [vmem:[#allocation23_spill] sm:$0xff] %v1761_v12  ;;  %v1764_v13 = vld [vmem:[%s1684_s26 + $0x40] sm:$0xff]  ;;  %v1771_v14 = vld [vmem:[%s1684_s26 + $0x58] sm:$0xff]  ;;  %v1774_v15 = vld [vmem:[%s1684_s26 + $0x50] sm:$0xff]  ;;  %v495_v23 = vmul.f32 2.9, %v1724_v5 }
  0x5d   : > { %2526 = vst [vmem:[#allocation24_spill] sm:$0xff] %v1764_v13  ;;  %2527 = vst [vmem:[#allocation25_spill] sm:$0xff] %v1774_v15  ;;  %v1781_v16 = vld [vmem:[%s1694_s15 + $0x28] sm:$0xff]  ;;  %v1784_v17 = vld [vmem:[%s1694_s15 + $0x20] sm:$0xff]  ;;  %v498_v24 = vmul.f32 2.9, %v1731_v6 }
  0x5e   : > { %v497_v25 = vmul.f32 2.9, %v1734_v7  ;;  %v500_v26 = vmul.f32 2.9, %v1741_v8  ;;  %v499_v27 = vmul.f32 2.9, %v1744_v9 }
  0x5f   : > { %319 = vrot.lane.b32.xlu1 %v1721_v4, %s1534_s5  ;;  %317 = vrot.lane.b32.xlu0 %v1724_v5, %s1534_s5  ;;  %v502_v28 = vmul.f32 2.9, %v1751_v10  ;;  %v501_v29 = vmul.f32 2.9, %v1754_v11  ;;  %v504_v30 = vmul.f32 2.9, %v1761_v12 }
  0x60   : > { %v503_v31 = vmul.f32 2.9, %v1764_v13  ;;  %v506_v32 = vmul.f32 2.9, %v1771_v14  ;;  %v505_v33 = vmul.f32 2.9, %v1774_v15 }
  0x61   : > { %v508_v34 = vmul.f32 2.9, %v1781_v16  ;;  %v507_v35 = vmul.f32 2.9, %v1784_v17  ;;  %s1536_s18 = smov 1   ;;  %s1537_s27 = smov 125  }
  0x62   : > { %vm427_vm1 = vcmask 1031168   ;;  %vm771_vm2 = vcmask 1046528   ;;  %vm960_vm3 = vcmask 1044480   ;;  %vm689_vm4 = vcmask 1022976   ;;  %s263_s29 = scalar_lea.vmem [#allocation7], %s1318_s19  ;;  %s1319_s3 = smul.u32 768, %s1514_s12 }
  0x63   : > { %323 = vrot.lane.b32.xlu1 %v1731_v6, %s1534_s5  ;;  %321 = vrot.lane.b32.xlu0 %v1734_v7, %s1534_s5  ;;  %vm875_vm5 = vcmask 1045504   ;;  %vm826_vm6 = vcmask 7168   ;;  %vm1063_vm7 = vcmask 1043456   ;;  %s1188_s30 = sshll.u32 %s263_s29, 4  ;;  %s1173_s12 = scalar_lea.sflag [#allocation4], %s1680_s4  ;;  %s2435_s30 = int_to_ptr.vmem [resolvable:$true] %s1188_s30 }
  0x64   : > { %s2440_s16 = scalar_lea.hbm %s2492_s2, %s1319_s3  ;;  %s1436_s20 = scalar_lea.vmem %s2435_s30, 768 }
  0x65   : > { %p1437_p4 = scmp.ne.s32.totalorder %s2435_s30, %s1436_s20  ;;  %p2558_p8 = scmp.ne.s32.totalorder %s2514_s22, 0 }
  0x66   : > { %s1538_s7 = smov [#allocation7]  }
  0x67   : > { %327 = vrot.lane.b32.xlu1 %v1741_v8, %s1534_s5  ;;  %325 = vrot.lane.b32.xlu0 %v1744_v9, %s1534_s5  ;;  %p1438_p9 = pnand %p1437_p4, %p2558_p8  ;;  %s1440_s28 = sshll.u32 %s1538_s7, 4  ;;  %s1441_s28 = int_to_ptr.vmem [resolvable:$false] %s1440_s28 }
  0x68   : > { %p1443_p12 = scmp.lt.s32.totalorder %s2435_s30, %s1441_s28 }
  0x69   : > { %p1439_p11 = pneg %p1438_p9 }
  0x6b   : > { %331 = vrot.lane.b32.xlu1 %v1751_v10, %s1534_s5  ;;  %329 = vrot.lane.b32.xlu0 %v1754_v11, %s1534_s5 }
  0x6f   : > { %335 = vrot.lane.b32.xlu1 %v1761_v12, %s1534_s5  ;;  %333 = vrot.lane.b32.xlu0 %v1764_v13, %s1534_s5 }
  0x73   : > { %339 = vrot.lane.b32.xlu1 %v1771_v14, %s1534_s5  ;;  %337 = vrot.lane.b32.xlu0 %v1774_v15, %s1534_s5 }
  0x77   : > { %343 = vrot.lane.b32.xlu1 %v1781_v16, %s1534_s5  ;;  %341 = vrot.lane.b32.xlu0 %v1784_v17, %s1534_s5 }
  0x7b   : > { %393 = vrot.lane.b32.xlu1 %v1714_v3, %s1535_s21  ;;  %391 = vrot.lane.b32.xlu0 %v1704_v1, %s1535_s21 }
  0x7f   : > { %397 = vrot.lane.b32.xlu1 %v1711_v2, %s1535_s21  ;;  %395 = vrot.lane.b32.xlu0 %v1701_v0, %s1535_s21 }
  0x83   : > { %401 = vrot.lane.b32.xlu1 %v1721_v4, %s1535_s21  ;;  %399 = vrot.lane.b32.xlu0 %v1724_v5, %s1535_s21 }
  0x87   : > { %405 = vrot.lane.b32.xlu1 %v1731_v6, %s1535_s21  ;;  %403 = vrot.lane.b32.xlu0 %v1734_v7, %s1535_s21 }
  0x8b   : > { %409 = vrot.lane.b32.xlu1 %v1741_v8, %s1535_s21  ;;  %407 = vrot.lane.b32.xlu0 %v1744_v9, %s1535_s21 }
  0x8f   : > { %413 = vrot.lane.b32.xlu1 %v1751_v10, %s1535_s21  ;;  %411 = vrot.lane.b32.xlu0 %v1754_v11, %s1535_s21 }
  0x93   : > { %417 = vrot.lane.b32.xlu1 %v1761_v12, %s1535_s21  ;;  %415 = vrot.lane.b32.xlu0 %v1764_v13, %s1535_s21 }
  0x97   : > { %421 = vrot.lane.b32.xlu1 %v1771_v14, %s1535_s21  ;;  %419 = vrot.lane.b32.xlu0 %v1774_v15, %s1535_s21 }
  0x9b   : > { %425 = vrot.lane.b32.xlu1 %v1781_v16, %s1535_s21  ;;  %423 = vrot.lane.b32.xlu0 %v1784_v17, %s1535_s21 }
  0x9f   : > { %529 = vrot.lane.b32.xlu1 %v492_v18, %s1534_s5  ;;  %527 = vrot.lane.b32.xlu0 %v491_v19, %s1534_s5 }
  0xa3   : > { %533 = vrot.lane.b32.xlu1 %v494_v20, %s1534_s5  ;;  %531 = vrot.lane.b32.xlu0 %v493_v21, %s1534_s5 }
  0xa7   : > { %537 = vrot.lane.b32.xlu1 %v496_v22, %s1534_s5  ;;  %535 = vrot.lane.b32.xlu0 %v495_v23, %s1534_s5 }
  0xab   : > { %541 = vrot.lane.b32.xlu1 %v498_v24, %s1534_s5  ;;  %539 = vrot.lane.b32.xlu0 %v497_v25, %s1534_s5 }
  0xaf   : > { %545 = vrot.lane.b32.xlu1 %v500_v26, %s1534_s5  ;;  %543 = vrot.lane.b32.xlu0 %v499_v27, %s1534_s5 }
  0xb3   : > { %549 = vrot.lane.b32.xlu1 %v502_v28, %s1534_s5  ;;  %547 = vrot.lane.b32.xlu0 %v501_v29, %s1534_s5 }
  0xb7   : > { %553 = vrot.lane.b32.xlu1 %v504_v30, %s1534_s5  ;;  %551 = vrot.lane.b32.xlu0 %v503_v31, %s1534_s5 }
  0xbb   : > { %557 = vrot.lane.b32.xlu1 %v506_v32, %s1534_s5  ;;  %555 = vrot.lane.b32.xlu0 %v505_v33, %s1534_s5 }
  0xbf   : > { %561 = vrot.lane.b32.xlu1 %v508_v34, %s1534_s5  ;;  %559 = vrot.lane.b32.xlu0 %v507_v35, %s1534_s5 }
  0xc3   : > { %610 = vrot.lane.b32.xlu1 %v1701_v0, %s1536_s18  ;;  %608 = vrot.lane.b32.xlu0 %v1704_v1, %s1536_s18 }
  0xc7   : > { %614 = vrot.lane.b32.xlu1 %v1734_v7, %s1536_s18  ;;  %612 = vrot.lane.b32.xlu0 %v1724_v5, %s1536_s18 }
  0xc9   : > { %v314_v36 = vpop.permute.xlu1 %313  ;;  %v310_v37 = vpop.permute.xlu0 %309 }
  0xcb   : > { %618 = vrot.lane.b32.xlu1 %v1754_v11, %s1536_s18  ;;  %616 = vrot.lane.b32.xlu0 %v1744_v9, %s1536_s18 }
  0xcd   : > { %v316_v38 = vpop.permute.xlu1 %315  ;;  %v312_v39 = vpop.permute.xlu0 %311 }
  0xce   : > { %v346_v54 = vsel %vm345_vm0, %v310_v37, %v312_v39  ;;  %v374_v55 = vadd.f32 %v312_v39, %v1714_v3  ;;  %v347_v59 = vsel %vm345_vm0, %v314_v36, %v316_v38  ;;  %v376_v63 = vadd.f32 %v316_v38, %v1711_v2 }
  0xcf   : > { %622 = vrot.lane.b32.xlu1 %v1774_v15, %s1536_s18  ;;  %620 = vrot.lane.b32.xlu0 %v1764_v13, %s1536_s18  ;;  %v373_v56 = vadd.f32 %v346_v54, %v1704_v1  ;;  %v375_v18 = vadd.f32 %v347_v59, %v1701_v0 }
  0xd1   : > { %v320_v40 = vpop.permute.xlu1 %319  ;;  %v318_v41 = vpop.permute.xlu0 %317 }
  0xd2   : > { %v348_v19 = vsel %vm345_vm0, %v318_v41, %v320_v40  ;;  %v378_v26 = vadd.f32 %v320_v40, %v1721_v4 }
  0xd3   : > { %624 = vrot.lane.b32.xlu0 %v1784_v17, %s1536_s18  ;;  %653 = vrot.lane.b32.xlu1 %v1704_v1, %s1537_s27  ;;  %v377_v28 = vadd.f32 %v348_v19, %v1724_v5 }
  0xd5   : > { %v324_v42 = vpop.permute.xlu1 %323  ;;  %v322_v43 = vpop.permute.xlu0 %321 }
  0xd6   : > { %v380_v29 = vadd.f32 %v324_v42, %v1731_v6  ;;  %v349_v30 = vsel %vm345_vm0, %v322_v43, %v324_v42 }
  0xd7   : > { %655 = vrot.lane.b32.xlu0 %v1714_v3, %s1537_s27  ;;  %657 = vrot.lane.b32.xlu1 %v1701_v0, %s1537_s27 }
  0xd9   : > { %v1886_v44 = vpop.permute.xlu1 %327  ;;  %v1888_v45 = vpop.permute.xlu0 %325 }
  0xdb   : > { %659 = vrot.lane.b32.xlu0 %v1711_v2, %s1537_s27  ;;  %661 = vrot.lane.b32.xlu1 %v1724_v5, %s1537_s27 }
  0xdd   : > { %v1894_v46 = vpop.permute.xlu1 %331  ;;  %v1896_v47 = vpop.permute.xlu0 %329 }
  0xdf   : > { %663 = vrot.lane.b32.xlu0 %v1721_v4, %s1537_s27  ;;  %665 = vrot.lane.b32.xlu1 %v1734_v7, %s1537_s27 }
  0xe1   : > { %v1902_v48 = vpop.permute.xlu1 %335  ;;  %v1904_v49 = vpop.permute.xlu0 %333 }
  0xe3   : > { %667 = vrot.lane.b32.xlu0 %v1731_v6, %s1537_s27  ;;  %669 = vrot.lane.b32.xlu1 %v1744_v9, %s1537_s27 }
  0xe5   : > { %v1910_v50 = vpop.permute.xlu1 %339  ;;  %v1912_v51 = vpop.permute.xlu0 %337 }
  0xe7   : > { %671 = vrot.lane.b32.xlu0 %v1741_v8, %s1537_s27  ;;  %673 = vrot.lane.b32.xlu1 %v1754_v11, %s1537_s27 }
  0xe9   : > { %v1918_v52 = vpop.permute.xlu1 %343  ;;  %v1920_v53 = vpop.permute.xlu0 %341 }
  0xeb   : > { %675 = vrot.lane.b32.xlu0 %v1751_v10, %s1537_s27  ;;  %677 = vrot.lane.b32.xlu1 %v1764_v13, %s1537_s27 }
  0xed   : > { %v394_v57 = vpop.permute.xlu1 %393  ;;  %v392_v58 = vpop.permute.xlu0 %391 }
  0xee   : > { %v456_v60 = vadd.f32 %v394_v57, %v374_v55  ;;  %v428_v61 = vsel %vm427_vm1, %v392_v58, %v394_v57  ;;  %v379_v55 = vadd.f32 %v349_v30, %v1734_v7 }
  0xef   : > { %v455_v62 = vadd.f32 %v428_v61, %v373_v56  ;;  %679 = vrot.lane.b32.xlu0 %v1761_v12, %s1537_s27  ;;  %681 = vrot.lane.b32.xlu1 %v1774_v15, %s1537_s27  ;;  %v350_v56 = vsel %vm345_vm0, %v1888_v45, %v1886_v44 }
  0xf0   : > { %v1938_v20 = vmul.f32 2.0, %v456_v60 }
  0xf1   : > { %v1940_v21 = vmul.f32 2.0, %v455_v62  ;;  %v398_v22 = vpop.permute.xlu1 %397  ;;  %v396_v23 = vpop.permute.xlu0 %395 }
  0xf2   : > { %v458_v24 = vadd.f32 %v398_v22, %v376_v63  ;;  %v429_v25 = vsel %vm427_vm1, %v396_v23, %v398_v22  ;;  %v775_v35 = vrot.slane %v1938_v20, 1  ;;  %v964_v36 = vrot.slane %v1938_v20, 3 }
  0xf3   : > { %v457_v27 = vadd.f32 %v429_v25, %v375_v18  ;;  %683 = vrot.lane.b32.xlu0 %v1771_v14, %s1537_s27  ;;  %685 = vrot.lane.b32.xlu1 %v1784_v17, %s1537_s27  ;;  %v961_v32 = vrot.slane %v1940_v21, 3  ;;  %v772_v43 = vrot.slane %v1940_v21, 1 }
  0xf4   : > { %v1951_v31 = vmul.f32 2.0, %v458_v24 }
  0xf5   : > { %v1954_v4 = vmul.f32 2.0, %v457_v27  ;;  %v402_v33 = vpop.permute.xlu1 %401  ;;  %v400_v34 = vpop.permute.xlu0 %399  ;;  %v382_v27 = vadd.f32 %v1886_v44, %v1741_v8 }
  0xf6   : > { %v460_v37 = vadd.f32 %v402_v33, %v378_v26  ;;  %v430_v38 = vsel %vm427_vm1, %v400_v34, %v402_v33  ;;  %v776_v39 = vrot.slane %v1951_v31, 1  ;;  %v965_v40 = vrot.slane %v1951_v31, 3 }
  0xf7   : > { %v962_v41 = vrot.slane %v1954_v4, 3  ;;  %v459_v42 = vadd.f32 %v430_v38, %v377_v28  ;;  %687 = vrot.lane.b32.xlu0 %v1781_v16, %s1537_s27  ;;  %v773_v54 = vrot.slane %v1954_v4, 1  ;;  %v381_v28 = vadd.f32 %v350_v56, %v1744_v9 }
  0xf8   : > { %v1970_v57 = vmul.f32 2.0, %v460_v37  ;;  %v1973_v58 = vsel %vm960_vm3, %v964_v36, %v965_v40  ;;  %v777_v63 = vsel %vm771_vm2, %v775_v35, %v776_v39 }
  0xf9   : > { %v1975_v59 = vmul.f32 2.0, %v459_v42  ;;  %v406_v60 = vpop.permute.xlu1 %405  ;;  %v404_v61 = vpop.permute.xlu0 %403  ;;  %v774_v62 = vsel %vm771_vm2, %v772_v43, %v773_v54  ;;  %v1980_v18 = vsel %vm960_vm3, %v961_v32, %v962_v41 }
  0xfa   : > { %v462_v19 = vadd.f32 %v406_v60, %v380_v29  ;;  %v431_v22 = vsel %vm427_vm1, %v404_v61, %v406_v60  ;;  %802 = vrot.lane.b32.xlu1 %v774_v62, %s1536_s18  ;;  %v780_v45 = vrot.slane %v1970_v57, 1  ;;  %v969_v23 = vrot.slane %v1970_v57, 3 }
  0xfb   : > { %v967_v24 = vrot.slane %v1975_v59, 3  ;;  %v461_v25 = vadd.f32 %v431_v22, %v379_v55  ;;  %804 = vrot.lane.b32.xlu0 %v777_v63, %s1536_s18  ;;  %v778_v26 = vrot.slane %v1975_v59, 1  ;;  %v351_v29 = vsel %vm345_vm0, %v1896_v47, %v1894_v46 }
  0xfc   : > { %v1996_v30 = vsel %vm960_vm3, %v965_v40, %v969_v23  ;;  %v1998_v32 = vmul.f32 2.0, %v462_v19  ;;  %v781_v47 = vsel %vm771_vm2, %v776_v39, %v780_v45  ;;  %v384_v40 = vadd.f32 %v1894_v46, %v1751_v10 }
  0xfd   : > { %v2000_v33 = vmul.f32 2.0, %v461_v25  ;;  %v410_v34 = vpop.permute.xlu1 %409  ;;  %v408_v35 = vpop.permute.xlu0 %407  ;;  %v779_v36 = vsel %vm771_vm2, %v773_v54, %v778_v26  ;;  %v2004_v37 = vsel %vm960_vm3, %v962_v41, %v967_v24  ;;  %v383_v43 = vadd.f32 %v351_v29, %v1754_v11 }
  0xfe   : > { %2528 = vst [vmem:[#allocation26_spill] sm:$0xff] %v2004_v37  ;;  %v464_v44 = vadd.f32 %v410_v34, %v382_v27  ;;  %v432_v38 = vsel %vm427_vm1, %v408_v35, %v410_v34  ;;  %806 = vrot.lane.b32.xlu1 %v779_v36, %s1536_s18  ;;  %v386_v54 = vadd.f32 %v1902_v48, %v1761_v12  ;;  %v785_v46 = vrot.slane %v1998_v32, 1 }
  0xff   : > { %v463_v42 = vadd.f32 %v432_v38, %v381_v28  ;;  %808 = vrot.lane.b32.xlu0 %v781_v47, %s1536_s18  ;;  %v352_v41 = vsel %vm345_vm0, %v1904_v49, %v1902_v48  ;;  %v971_v56 = vrot.slane %v2000_v33, 3  ;;  %v974_v61 = vrot.slane %v1998_v32, 3 }
 0x100   : > { %v2018_v55 = vmul.f32 2.0, %v464_v44  ;;  %v782_v22 = vrot.slane %v2000_v33, 1  ;;  %v385_v23 = vadd.f32 %v352_v41, %v1764_v13  ;;  %v353_v27 = vsel %vm345_vm0, %v1912_v51, %v1910_v50 }
 0x101   : > { %v2021_v39 = vmul.f32 2.0, %v463_v42  ;;  %v414_v60 = vpop.permute.xlu1 %413  ;;  %v412_v10 = vpop.permute.xlu0 %411 }
 0x102   : > { %v466_v11 = vadd.f32 %v414_v60, %v384_v40  ;;  %v433_v62 = vsel %vm427_vm1, %v412_v10, %v414_v60  ;;  %v786_v63 = vrot.slane %v2018_v55, 1  ;;  %v975_v19 = vrot.slane %v2018_v55, 3 }
 0x103   : > { %v972_v48 = vrot.slane %v2021_v39, 3  ;;  %v465_v49 = vadd.f32 %v433_v62, %v383_v43  ;;  %v783_v45 = vrot.slane %v2021_v39, 1  ;;  %v388_v40 = vadd.f32 %v1910_v50, %v1771_v14 }
 0x104   : > { %v2032_v24 = vmul.f32 2.0, %v466_v11  ;;  %v787_v25 = vsel %vm771_vm2, %v785_v46, %v786_v63  ;;  %v2036_v26 = vsel %vm960_vm3, %v974_v61, %v975_v19 }
 0x105   : > { %2529 = vst [vmem:[#allocation27_spill] sm:$0xff] %v2036_v26  ;;  %v2041_v28 = vmul.f32 2.0, %v465_v49  ;;  %v418_v29 = vpop.permute.xlu1 %417  ;;  %v416_v34 = vpop.permute.xlu0 %415  ;;  %812 = vrot.lane.b32.xlu0 %v787_v25, %s1536_s18  ;;  %v784_v35 = vsel %vm771_vm2, %v782_v22, %v783_v45  ;;  %v2046_v36 = vsel %vm960_vm3, %v971_v56, %v972_v48  ;;  %v387_v56 = vadd.f32 %v353_v27, %v1774_v15 }
 0x106   : > { %2530 = vst [vmem:[#allocation28_spill] sm:$0xff] %v2046_v36  ;;  %v468_v44 = vadd.f32 %v418_v29, %v386_v54  ;;  %v434_v38 = vsel %vm427_vm1, %v416_v34, %v418_v29  ;;  %810 = vrot.lane.b32.xlu1 %v784_v35, %s1536_s18  ;;  %v790_v47 = vrot.slane %v2032_v24, 1  ;;  %v979_v51 = vrot.slane %v2032_v24, 3 }
 0x107   : > { %v977_v42 = vrot.slane %v2041_v28, 3  ;;  %v467_v43 = vadd.f32 %v434_v38, %v385_v23  ;;  %v788_v41 = vrot.slane %v2041_v28, 1  ;;  %v354_v54 = vsel %vm345_vm0, %v1920_v53, %v1918_v52 }
 0x108   : > { %v791_v60 = vsel %vm771_vm2, %v786_v63, %v790_v47  ;;  %v2062_v10 = vsel %vm960_vm3, %v975_v19, %v979_v51  ;;  %v2064_v46 = vmul.f32 2.0, %v468_v44  ;;  %v390_v19 = vadd.f32 %v1918_v52, %v1781_v16 }
 0x109   : > { %2531 = vst [vmem:[#allocation29_spill] sm:$0xff] %v2062_v10  ;;  %v2066_v61 = vmul.f32 2.0, %v467_v43  ;;  %v422_v14 = vpop.permute.xlu1 %421  ;;  %v420_v50 = vpop.permute.xlu0 %419  ;;  %816 = vrot.lane.b32.xlu0 %v791_v60, %s1536_s18  ;;  %v789_v11 = vsel %vm771_vm2, %v783_v45, %v788_v41  ;;  %v2071_v62 = vsel %vm960_vm3, %v972_v48, %v977_v42  ;;  %v389_v22 = vadd.f32 %v354_v54, %v1784_v17 }
 0x10a   : > { %2532 = vst [vmem:[#allocation30_spill] sm:$0xff] %v2071_v62  ;;  %v470_v49 = vadd.f32 %v422_v14, %v388_v40  ;;  %v435_v53 = vsel %vm427_vm1, %v420_v50, %v422_v14  ;;  %814 = vrot.lane.b32.xlu1 %v789_v11, %s1536_s18  ;;  %v984_v25 = vrot.slane %v2064_v46, 3  ;;  %v795_v34 = vrot.slane %v2064_v46, 1 }
 0x10b   : > { %v469_v63 = vadd.f32 %v435_v53, %v387_v56  ;;  %v981_v45 = vrot.slane %v2066_v61, 3  ;;  %v792_v47 = vrot.slane %v2066_v61, 1 }
 0x10c   : > { %v2078_v23 = vmul.f32 2.0, %v470_v49 }
 0x10d   : > { %v2082_v27 = vmul.f32 2.0, %v469_v63  ;;  %v426_v48 = vpop.permute.xlu1 %425  ;;  %v424_v29 = vpop.permute.xlu0 %423 }
 0x10e   : > { %v985_v35 = vrot.slane %v2078_v23, 3  ;;  %v472_v44 = vadd.f32 %v426_v48, %v390_v19  ;;  %v436_v38 = vsel %vm427_vm1, %v424_v29, %v426_v48  ;;  %v796_v16 = vrot.slane %v2078_v23, 1 }
 0x10f   : > { %v982_v17 = vrot.slane %v2082_v27, 3  ;;  %v471_v52 = vadd.f32 %v436_v38, %v389_v22  ;;  %v793_v51 = vrot.slane %v2082_v27, 1 }
 0x110   : > { %v2091_v40 = vmul.f32 2.0, %v472_v44  ;;  %v797_v42 = vsel %vm771_vm2, %v795_v34, %v796_v16  ;;  %v2095_v43 = vsel %vm960_vm3, %v984_v25, %v985_v35 }
 0x111   : > { %2533 = vst [vmem:[#allocation31_spill] sm:$0xff] %v2095_v43  ;;  %v2097_v41 = vmul.f32 2.0, %v471_v52  ;;  %v530_v56 = vpop.permute.xlu1 %529  ;;  %820 = vrot.lane.b32.xlu0 %v797_v42, %s1536_s18  ;;  %v528_v54 = vpop.permute.xlu0 %527  ;;  %v794_v60 = vsel %vm771_vm2, %v792_v47, %v793_v51  ;;  %v2102_v14 = vsel %vm960_vm3, %v981_v45, %v982_v17 }
 0x112   : > { %2534 = vst [vmem:[#allocation32_spill] sm:$0xff] %v2102_v14  ;;  %v989_v50 = vrot.slane %v2091_v40, 3  ;;  %818 = vrot.lane.b32.xlu1 %v794_v60, %s1536_s18  ;;  %v800_v11 = vrot.slane %v2091_v40, 1  ;;  %v563_v6 = vsel %vm345_vm0, %v528_v54, %v530_v56  ;;  %v591_v7 = vadd.f32 %v530_v56, %v1938_v20 }
 0x113   : > { %v987_v49 = vrot.slane %v2097_v41, 3  ;;  %v798_v53 = vrot.slane %v2097_v41, 1  ;;  %v590_v0 = vadd.f32 %v563_v6, %v1940_v21 }
 0x114   : > { %v801_v63 = vsel %vm771_vm2, %v796_v16, %v800_v11  ;;  %v2111_v19 = vsel %vm960_vm3, %v985_v35, %v989_v50 }
 0x115   : > { %2535 = vst [vmem:[#allocation33_spill] sm:$0xff] %v2111_v19  ;;  %v534_v22 = vpop.permute.xlu1 %533  ;;  %824 = vrot.lane.b32.xlu0 %v801_v63, %s1536_s18  ;;  %v532_v25 = vpop.permute.xlu0 %531  ;;  %v799_v45 = vsel %vm771_vm2, %v793_v51, %v798_v53  ;;  %v2116_v48 = vsel %vm960_vm3, %v982_v17, %v987_v49 }
 0x116   : > { %2536 = vst [vmem:[#allocation34_spill] sm:$0xff] %v2116_v48  ;;  %822 = vrot.lane.b32.xlu1 %v799_v45, %s1536_s18  ;;  %v564_v2 = vsel %vm345_vm0, %v532_v25, %v534_v22  ;;  %v593_v48 = vadd.f32 %v534_v22, %v1951_v31 }
 0x117   : > { %v592_v43 = vadd.f32 %v564_v2, %v1954_v4 }
 0x119   : > { %v538_v29 = vpop.permute.xlu1 %537  ;;  %v536_v34 = vpop.permute.xlu0 %535 }
 0x11a   : > { %v565_v10 = vsel %vm345_vm0, %v536_v34, %v538_v29  ;;  %v595_v6 = vadd.f32 %v538_v29, %v1970_v57 }
 0x11d   : > { %v2119_v44 = vpop.permute.xlu1 %541  ;;  %v540_v38 = vpop.permute.xlu0 %539 }
 0x121   : > { %v2121_v16 = vpop.permute.xlu1 %545  ;;  %v544_v35 = vpop.permute.xlu0 %543 }
 0x125   : > { %v2123_v52 = vpop.permute.xlu1 %549  ;;  %v2125_v47 = vpop.permute.xlu0 %547 }
 0x129   : > { %v2127_v42 = vpop.permute.xlu1 %553  ;;  %v2129_v51 = vpop.permute.xlu0 %551 }
 0x12d   : > { %v2131_v17 = vpop.permute.xlu1 %557  ;;  %v2133_v60 = vpop.permute.xlu0 %555 }
 0x131   : > { %v2135_v50 = vpop.permute.xlu1 %561  ;;  %v2137_v11 = vpop.permute.xlu0 %559 }
 0x135   : > { %v611_v49 = vpop.permute.xlu1 %610  ;;  %v609_v53 = vpop.permute.xlu0 %608 }
 0x136   : > { %v636_v19 = vsub.f32 %v591_v7, %v609_v53  ;;  %v635_v62 = vsub.f32 %v590_v0, %v609_v53  ;;  %v638_v54 = vsub.f32 %v593_v48, %v611_v49  ;;  %v637_v26 = vsub.f32 %v592_v43, %v611_v49 }
 0x137   : > { %v594_v7 = vadd.f32 %v565_v10, %v1975_v59  ;;  %v599_v49 = vadd.f32 %v2121_v16, %v2018_v55 }
 0x139   : > { %v2139_v63 = vpop.permute.xlu1 %614  ;;  %v613_v45 = vpop.permute.xlu0 %612 }
 0x13a   : > { %v639_v4 = vsub.f32 %v594_v7, %v613_v45 }
 0x13d   : > { %v2141_v15 = vpop.permute.xlu1 %618  ;;  %v2143_v5 = vpop.permute.xlu0 %616 }
 0x13e   : > { %v644_v55 = vsub.f32 %v599_v49, %v2143_v5 }
 0x141   : > { %v2145_v12 = vpop.permute.xlu1 %622  ;;  %v2147_v13 = vpop.permute.xlu0 %620 }
 0x145   : > { %v2149_v8 = vpop.permute.xlu0 %624  ;;  %v654_v9 = vpop.permute.xlu1 %653 }
 0x149   : > { %v656_v3 = vpop.permute.xlu0 %655  ;;  %v658_v1 = vpop.permute.xlu1 %657 }
 0x14a   : > { %v690_v14 = vsel %vm689_vm4, %v654_v9, %v656_v3  ;;  %v718_v36 = vsub.f32 %v636_v19, %v656_v3  ;;  %v640_v9 = vsub.f32 %v595_v6, %v613_v45 }
 0x14b   : > { %v717_v20 = vsub.f32 %v635_v62, %v690_v14  ;;  %v566_v62 = vsel %vm345_vm0, %v540_v38, %v2119_v44 }
 0x14c   : > { %v879_v2 = vrot.slane %v718_v36, 2  ;;  %v596_v10 = vadd.f32 %v566_v62, %v2000_v33 }
 0x14d   : > { %v660_v56 = vpop.permute.xlu0 %659  ;;  %v662_v25 = vpop.permute.xlu1 %661  ;;  %v876_v22 = vrot.slane %v717_v20, 2 }
 0x14e   : > { %v691_v21 = vsel %vm689_vm4, %v658_v1, %v660_v56  ;;  %v720_v37 = vsub.f32 %v638_v54, %v660_v56  ;;  %v568_v54 = vsel %vm345_vm0, %v2125_v47, %v2123_v52 }
 0x14f   : > { %v719_v31 = vsub.f32 %v637_v26, %v691_v21  ;;  %v567_v26 = vsel %vm345_vm0, %v544_v35, %v2121_v16  ;;  %v641_v35 = vsub.f32 %v596_v10, %v2139_v63  ;;  %v600_v7 = vadd.f32 %v568_v54, %v2041_v28 }
 0x150   : > { %v880_v0 = vrot.slane %v720_v37, 2  ;;  %v597_v37 = vadd.f32 %v2119_v44, %v1998_v32  ;;  %v598_v44 = vadd.f32 %v567_v26, %v2021_v39  ;;  %v571_v10 = vsel %vm345_vm0, %v2137_v11, %v2135_v50 }
 0x151   : > { %v877_v48 = vrot.slane %v719_v31, 2  ;;  %v664_v3 = vpop.permute.xlu0 %663  ;;  %v666_v43 = vpop.permute.xlu1 %665 }
 0x152   : > { %v692_v57 = vsel %vm689_vm4, %v662_v25, %v664_v3  ;;  %v722_v14 = vsub.f32 %v640_v9, %v664_v3  ;;  %v881_v1 = vsel %vm875_vm5, %v879_v2, %v880_v0  ;;  %v642_v53 = vsub.f32 %v597_v37, %v2139_v63 }
 0x153   : > { %v721_v19 = vsub.f32 %v639_v4, %v692_v57  ;;  %908 = vrot.lane.b32.xlu0 %v881_v1, %s1536_s18  ;;  %v878_v59 = vsel %vm875_vm5, %v876_v22, %v877_v48  ;;  %v643_v20 = vsub.f32 %v598_v44, %v2143_v5  ;;  %v601_v63 = vadd.f32 %v2123_v52, %v2032_v24 }
 0x154   : > { %v884_v36 = vrot.slane %v722_v14, 2  ;;  %906 = vrot.lane.b32.xlu1 %v878_v59, %s1536_s18  ;;  %v569_v24 = vsel %vm345_vm0, %v2129_v51, %v2127_v42  ;;  %v570_v57 = vsel %vm345_vm0, %v2133_v60, %v2131_v17  ;;  %v605_v37 = vadd.f32 %v2131_v17, %v2078_v23 }
 0x155   : > { %v882_v29 = vrot.slane %v721_v19, 2  ;;  %v668_v34 = vpop.permute.xlu0 %667  ;;  %v670_v38 = vpop.permute.xlu1 %669  ;;  %v646_v47 = vsub.f32 %v601_v63, %v2141_v15  ;;  %v602_v51 = vadd.f32 %v569_v24, %v2066_v61  ;;  %v2537_v63 = vld [vmem:[#allocation26_spill] sm:$0xff] }
 0x156   : > { %v693_v45 = vsel %vm689_vm4, %v666_v43, %v668_v34  ;;  %v885_v32 = vsel %vm875_vm5, %v880_v0, %v884_v36  ;;  %v724_v16 = vsub.f32 %v642_v53, %v668_v34  ;;  %v645_v0 = vsub.f32 %v600_v7, %v2141_v15  ;;  %v2540_v7 = vld [vmem:[#allocation29_spill] sm:$0xff] }
 0x157   : > { %912 = vrot.lane.b32.xlu0 %v885_v32, %s1536_s18  ;;  %v883_v33 = vsel %vm875_vm5, %v877_v48, %v882_v29  ;;  %v723_v56 = vsub.f32 %v641_v35, %v693_v45  ;;  %v603_v15 = vadd.f32 %v2127_v42, %v2064_v46  ;;  %v604_v42 = vadd.f32 %v570_v57, %v2082_v27 }
 0x158   : > { %910 = vrot.lane.b32.xlu1 %v883_v33, %s1536_s18  ;;  %v889_v9 = vrot.slane %v724_v16, 2  ;;  %v647_v60 = vsub.f32 %v602_v51, %v2147_v13  ;;  %v650_v23 = vsub.f32 %v605_v37, %v2145_v12  ;;  %v606_v53 = vadd.f32 %v571_v10, %v2097_v41  ;;  %v2546_v37 = vld [vmem:[#allocation15_spill] sm:$0xff]  ;;  %v2549_v10 = vld [vmem:[#allocation16_spill] sm:$0xff] }
 0x159   : > { %v672_v25 = vpop.permute.xlu0 %671  ;;  %v674_v39 = vpop.permute.xlu1 %673  ;;  %v886_v4 = vrot.slane %v723_v56, 2  ;;  %v648_v26 = vsub.f32 %v603_v15, %v2147_v13  ;;  %v649_v29 = vsub.f32 %v604_v42, %v2145_v12  ;;  %v607_v13 = vadd.f32 %v2135_v50, %v2091_v40 }
 0x15a   : > { %v694_v6 = vsel %vm689_vm4, %v670_v38, %v672_v25  ;;  %v726_v21 = vsub.f32 %v644_v55, %v672_v25  ;;  %v651_v33 = vsub.f32 %v606_v53, %v2149_v8  ;;  %v2551_v53 = vld [vmem:[#allocation19_spill] sm:$0xff] }
 0x15b   : > { %v725_v31 = vsub.f32 %v643_v20, %v694_v6  ;;  %v652_v11 = vsub.f32 %v607_v13, %v2149_v8  ;;  %v2538_v6 = vld [vmem:[#allocation27_spill] sm:$0xff] }
 0x15c   : > { %v890_v2 = vrot.slane %v726_v21, 2  ;;  %v2539_v21 = vld [vmem:[#allocation28_spill] sm:$0xff] }
 0x15d   : > { %v887_v5 = vrot.slane %v725_v31, 2  ;;  %v676_v22 = vpop.permute.xlu0 %675  ;;  %v678_v48 = vpop.permute.xlu1 %677  ;;  %v2544_v31 = vld [vmem:[#allocation33_spill] sm:$0xff] }
 0x15e   : > { %v695_v52 = vsel %vm689_vm4, %v674_v39, %v676_v22  ;;  %v728_v3 = vsub.f32 %v646_v47, %v676_v22  ;;  %v891_v28 = vsel %vm875_vm5, %v889_v9, %v890_v2  ;;  %v2545_v47 = vld [vmem:[#allocation34_spill] sm:$0xff] }
 0x15f   : > { %v727_v43 = vsub.f32 %v645_v0, %v695_v52  ;;  %916 = vrot.lane.b32.xlu0 %v891_v28, %s1536_s18  ;;  %v888_v62 = vsel %vm875_vm5, %v886_v4, %v887_v5 }
 0x160   : > { %v894_v14 = vrot.slane %v728_v3, 2  ;;  %914 = vrot.lane.b32.xlu1 %v888_v62, %s1536_s18 }
 0x161   : > { %v892_v1 = vrot.slane %v727_v43, 2  ;;  %v680_v19 = vpop.permute.xlu0 %679  ;;  %v682_v59 = vpop.permute.xlu1 %681 }
 0x162   : > { %v696_v36 = vsel %vm689_vm4, %v678_v48, %v680_v19  ;;  %v895_v46 = vsel %vm875_vm5, %v890_v2, %v894_v14  ;;  %v730_v17 = vsub.f32 %v648_v26, %v680_v19  ;;  %v735_v26 = vsub.f32 0.0, %v2546_v37 }
 0x163   : > { %920 = vrot.lane.b32.xlu0 %v895_v46, %s1536_s18  ;;  %v893_v61 = vsel %vm875_vm5, %v887_v5, %v892_v1  ;;  %v729_v34 = vsub.f32 %v647_v60, %v696_v36  ;;  %v2547_v36 = vld [vmem:[#allocation17_spill] sm:$0xff]  ;;  %v2548_v60 = vld [vmem:[#allocation14_spill] sm:$0xff] }
 0x164   : > { %918 = vrot.lane.b32.xlu1 %v893_v61, %s1536_s18  ;;  %v899_v44 = vrot.slane %v730_v17, 2  ;;  %v736_v46 = vsub.f32 0.0, %v2547_v36  ;;  %v737_v61 = vsub.f32 0.0, %v2548_v60  ;;  %v2550_v17 = vld [vmem:[#allocation20_spill] sm:$0xff] }
 0x165   : > { %v684_v38 = vpop.permute.xlu0 %683  ;;  %v686_v32 = vpop.permute.xlu1 %685  ;;  %v896_v54 = vrot.slane %v729_v34, 2 }
 0x166   : > { %v697_v27 = vsel %vm689_vm4, %v682_v59, %v684_v38  ;;  %v732_v49 = vsub.f32 %v650_v23, %v684_v38  ;;  %v738_v23 = vsub.f32 0.0, %v2549_v10  ;;  %v1064_v38 = vrot.slane %v735_v26, 4 }
 0x167   : > { %v731_v45 = vsub.f32 %v649_v29, %v697_v27  ;;  %v741_v29 = vsub.f32 0.0, %v2550_v17  ;;  %v1067_v13 = vrot.slane %v736_v46, 4  ;;  %v1065_v27 = vrot.slane %v737_v61, 4 }
 0x168   : > { %v900_v35 = vrot.slane %v732_v49, 2  ;;  %v1068_v49 = vrot.slane %v738_v23, 4 }
 0x169   : > { %v897_v12 = vrot.slane %v731_v45, 2  ;;  %v688_v55 = vpop.permute.xlu0 %687  ;;  %v742_v45 = vsub.f32 0.0, %v2551_v53  ;;  %v1066_v37 = vsel %vm1063_vm7, %v1064_v38, %v1065_v27  ;;  %v1403_v38 = vld [vmem:[%s1694_s15 + $0x10] sm:$0xff] }
 0x16a   : > { %v698_v16 = vsel %vm689_vm4, %v686_v32, %v688_v55  ;;  %v734_v20 = vsub.f32 %v652_v11, %v688_v55  ;;  %v901_v40 = vsel %vm875_vm5, %v899_v44, %v900_v35  ;;  %v2297_v32 = vrot.slane %v741_v29, 4  ;;  %v2552_v44 = vld [vmem:[#allocation22_spill] sm:$0xff] }
 0x16b   : > { %v733_v50 = vsub.f32 %v651_v33, %v698_v16  ;;  %924 = vrot.lane.b32.xlu0 %v901_v40, %s1536_s18  ;;  %v898_v41 = vsel %vm875_vm5, %v896_v54, %v897_v12  ;;  %v2553_v33 = vld [vmem:[#allocation21_spill] sm:$0xff]  ;;  %v1069_v36 = vsel %vm1063_vm7, %v1067_v13, %v1068_v49 }
 0x16c   : > { %v904_v56 = vrot.slane %v734_v20, 2  ;;  %922 = vrot.lane.b32.xlu1 %v898_v41, %s1536_s18  ;;  %v803_v2 = vpop.permute.xlu1 %802  ;;  %v744_v54 = vsub.f32 0.0, %v2553_v33  ;;  %v2555_v20 = vld [vmem:[#allocation23_spill] sm:$0xff]  ;;  %v2556_v41 = vld [vmem:[#allocation18_spill] sm:$0xff] }
 0x16d   : > { %v902_v25 = vrot.slane %v733_v50, 2  ;;  %v805_v9 = vpop.permute.xlu0 %804  ;;  %v748_v40 = vsub.f32 0.0, %v2555_v20 }
 0x16e   : > { %v905_v39 = vsel %vm875_vm5, %v900_v35, %v904_v56  ;;  %v827_v11 = vsel %vm826_vm6, %v803_v2, %v805_v9  ;;  %v743_v35 = vsub.f32 0.0, %v2552_v44  ;;  %v739_v56 = vsub.f32 0.0, %v2556_v41 }
 0x16f   : > { %928 = vrot.lane.b32.xlu0 %v905_v39, %s1536_s18  ;;  %v903_v8 = vsel %vm875_vm5, %v897_v12, %v902_v25  ;;  %v2554_v12 = vld [vmem:[#allocation24_spill] sm:$0xff]  ;;  %v1401_v25 = vld [vmem:[%s1694_s15 + $0x8] sm:$0xff] }
 0x170   : > { %926 = vrot.lane.b32.xlu1 %v903_v8, %s1536_s18  ;;  %v807_v4 = vpop.permute.xlu1 %806  ;;  %v747_v55 = vsub.f32 0.0, %v2554_v12  ;;  %v740_v39 = vsub.f32 0.0, %v1401_v25  ;;  %v845_v8 = vadd.f32 %v803_v2, %v735_v26  ;;  %v1070_v60 = vrot.slane %v739_v56, 4  ;;  %v2334_v25 = vld [vmem:[%s1684_s26 + $0x58] sm:$0xff]  ;;  %s1442_s26 = scalar_lea.vmem %s1441_s28, 1536 }
 0x171   : > { %v809_v0 = vpop.permute.xlu0 %808  ;;  %v847_v17 = vadd.f32 %v807_v4, %v737_v61  ;;  %v1404_v61 = vld [vmem:[%s1694_s15 + $0x18] sm:$0xff]  ;;  %p1444_p7 = scmp.lt.s32.totalorder %s1442_s26, %s1436_s20 }
 0x172   : > { %v1072_v10 = vrot.slane %v740_v39, 4 }
 0x173   : > { %993 = vrot.lane.b32.xlu0 %v1973_v58, %s1536_s18  ;;  %v2541_v58 = vld [vmem:[#allocation30_spill] sm:$0xff]  ;;  %p1445_p10 = por %p1444_p7, %p1443_p12 }
 0x174   : > { %991 = vrot.lane.b32.xlu1 %v1980_v18, %s1536_s18  ;;  %v2542_v18 = vld [vmem:[#allocation31_spill] sm:$0xff] }
 0x175   : > { %p1446_p13 = pnand %p1445_p10, %p1439_p11 }
 0x177   : > { %997 = vrot.lane.b32.xlu0 %v1996_v30, %s1536_s18  ;;  %v2543_v30 = vld [vmem:[#allocation32_spill] sm:$0xff]  ;;  %v2263_v5 = vpop.permute.xlu0 %812 }
 0x178   : > { %995 = vrot.lane.b32.xlu1 %v2537_v63, %s1536_s18  ;;  %v2265_v22 = vpop.permute.xlu1 %810  ;;  %v1077_v63 = vrot.slane %v742_v45, 4 }
 0x179   : > { %v829_v13 = vsel %vm826_vm6, %v2265_v22, %v2263_v5 }
 0x17b   : > { %1001 = vrot.lane.b32.xlu0 %v2538_v6, %s1536_s18  ;;  %v2267_v48 = vpop.permute.xlu0 %816  ;;  %v2312_v6 = vrot.slane %v743_v35, 4 }
 0x17c   : > { %999 = vrot.lane.b32.xlu1 %v2539_v21, %s1536_s18  ;;  %v2269_v24 = vpop.permute.xlu1 %814 }
 0x17f   : > { %1005 = vrot.lane.b32.xlu0 %v2540_v7, %s1536_s18  ;;  %v846_v7 = vadd.f32 %v827_v11, %v736_v46 }
 0x180   : > { %1003 = vrot.lane.b32.xlu1 %v2541_v58, %s1536_s18  ;;  %v2317_v58 = vrot.slane %v744_v54, 4 }
 0x183   : > { %1009 = vrot.lane.b32.xlu0 %v2542_v18, %s1536_s18  ;;  %v2271_v52 = vpop.permute.xlu0 %820  ;;  %v2321_v18 = vrot.slane %v747_v55, 4 }
 0x184   : > { %1007 = vrot.lane.b32.xlu1 %v2543_v30, %s1536_s18  ;;  %v2273_v3 = vpop.permute.xlu1 %818  ;;  %v2325_v30 = vrot.slane %v748_v40, 4 }
 0x187   : > { %1013 = vrot.lane.b32.xlu0 %v2544_v31, %s1536_s18  ;;  %v2275_v28 = vpop.permute.xlu0 %824  ;;  %v828_v31 = vsel %vm826_vm6, %v807_v4, %v809_v0 }
 0x188   : > { %1011 = vrot.lane.b32.xlu1 %v2545_v47, %s1536_s18  ;;  %v2277_v43 = vpop.permute.xlu1 %822  ;;  %v2557_v47 = vld [vmem:[#allocation25_spill] sm:$0xff]  ;;  %v848_v41 = vadd.f32 %v828_v31, %v738_v23  ;;  %v1071_v23 = vsel %vm1063_vm7, %v1065_v27, %v1070_v60  ;;  %v1073_v31 = vsel %vm1063_vm7, %v1068_v49, %v1072_v10 }
 0x189   : > { %v749_v9 = vsub.f32 0.0, %v2557_v47 }
 0x1c5   : > { %v909_v62 = vpop.permute.xlu0 %908 }
 0x1c6   : > { %v907_v15 = vpop.permute.xlu1 %906 }
 0x1c7   : > { %v930_v21 = vsel %vm826_vm6, %v907_v15, %v909_v62  ;;  %v948_v2 = vadd.f32 %v907_v15, %v845_v8  ;;  %v750_v15 = vsub.f32 0.0, %v2334_v25 }
 0x1c8   : > { %v949_v26 = vadd.f32 %v930_v21, %v846_v7  ;;  %v745_v21 = vsub.f32 0.0, %v1403_v38 }
 0x1c9   : > { %v913_v57 = vpop.permute.xlu0 %912 }
 0x1ca   : > { %v911_v14 = vpop.permute.xlu1 %910  ;;  %v1080_v49 = vrot.slane %v745_v21, 4 }
 0x1cb   : > { %v931_v53 = vsel %vm826_vm6, %v911_v14, %v913_v57  ;;  %v950_v56 = vadd.f32 %v911_v14, %v847_v17  ;;  %v746_v57 = vsub.f32 0.0, %v1404_v61  ;;  %v1406_v61 = vld [vmem:[%s1694_s15 + $0x28] sm:$0xff] }
 0x1cc   : > { %v951_v7 = vadd.f32 %v931_v53, %v848_v41  ;;  %v851_v41 = vadd.f32 %v2269_v24, %v743_v35 }
 0x1cd   : > { %v1082_v10 = vrot.slane %v746_v57, 4  ;;  %v752_v57 = vsub.f32 0.0, %v1406_v61 }
 0x1cf   : > { %v1083_v33 = vsel %vm1063_vm7, %v2317_v58, %v1082_v10 }
 0x1d1   : > { %v2279_v51 = vpop.permute.xlu0 %916 }
 0x1d2   : > { %v2281_v1 = vpop.permute.xlu1 %914 }
 0x1d5   : > { %v2283_v19 = vpop.permute.xlu0 %920 }
 0x1d6   : > { %v2285_v59 = vpop.permute.xlu1 %918 }
 0x1d7   : > { %v954_v35 = vadd.f32 %v2285_v59, %v851_v41 }
 0x1dd   : > { %v2289_v42 = vpop.permute.xlu0 %924 }
 0x1de   : > { %v2294_v34 = vpop.permute.xlu1 %922 }
 0x1e1   : > { %v2303_v16 = vpop.permute.xlu0 %928 }
 0x1e2   : > { %v2306_v50 = vpop.permute.xlu1 %926 }
 0x1e5   : > { %v994_v62 = vpop.permute.xlu0 %993 }
 0x1e6   : > { %v992_v46 = vpop.permute.xlu1 %991 }
 0x1e7   : > { %v1015_v11 = vsel %vm826_vm6, %v992_v46, %v994_v62  ;;  %v1033_v0 = vadd.f32 %v992_v46, %v948_v2  ;;  %v932_v46 = vsel %vm826_vm6, %v2281_v1, %v2279_v51 }
 0x1e8   : > { %v1034_v8 = vadd.f32 %v1015_v11, %v949_v26  ;;  %v849_v26 = vadd.f32 %v2265_v22, %v741_v29  ;;  %v830_v22 = vsel %vm826_vm6, %v2269_v24, %v2267_v48  ;;  %v1079_v11 = vsel %vm1063_vm7, %v1077_v63, %v2317_v58 }
 0x1e9   : > { %v1106_v39 = vadd.f32 %v1066_v37, %v1033_v0  ;;  %v998_v4 = vpop.permute.xlu0 %997  ;;  %v850_v37 = vadd.f32 %v829_v13, %v742_v45  ;;  %v1076_v45 = vsel %vm1063_vm7, %v2297_v32, %v2312_v6  ;;  %v933_v48 = vsel %vm826_vm6, %v2285_v59, %v2283_v19 }
 0x1ea   : > { %v1107_v62 = vadd.f32 %v1069_v36, %v1034_v8  ;;  %v996_v2 = vpop.permute.xlu1 %995  ;;  %v2352_v36 = vrot.slane %v749_v9, 4  ;;  %v952_v51 = vadd.f32 %v2281_v1, %v849_v26  ;;  %v852_v32 = vadd.f32 %v830_v22, %v744_v54 }
 0x1eb   : > { %v1016_v5 = vsel %vm826_vm6, %v996_v2, %v998_v4  ;;  %v1035_v14 = vadd.f32 %v996_v2, %v950_v56  ;;  %1130 = vrot.lane.b32.xlu1 %v1106_v39, %s1535_s21  ;;  %v953_v17 = vadd.f32 %v932_v46, %v850_v37  ;;  %v1088_v63 = vrot.slane %v750_v15, 4  ;;  %v1405_v39 = vld [vmem:[%s1694_s15 + $0x20] sm:$0xff] }
 0x1ec   : > { %v1036_v27 = vadd.f32 %v1016_v5, %v951_v7  ;;  %1132 = vrot.lane.b32.xlu0 %v1107_v62, %s1535_s21  ;;  %v1081_v24 = vsel %vm1063_vm7, %v2312_v6, %v1080_v49  ;;  %v831_v19 = vsel %vm826_vm6, %v2273_v3, %v2271_v52  ;;  %v955_v54 = vadd.f32 %v933_v48, %v852_v32 }
 0x1ed   : > { %v1108_v29 = vadd.f32 %v1071_v23, %v1035_v14  ;;  %v1002_v60 = vpop.permute.xlu0 %1001  ;;  %v751_v4 = vsub.f32 0.0, %v1405_v39  ;;  %v853_v6 = vadd.f32 %v2273_v3, %v747_v55  ;;  %v934_v52 = vsel %vm826_vm6, %v2294_v34, %v2289_v42 }
 0x1ee   : > { %v1109_v53 = vadd.f32 %v1073_v31, %v1036_v27  ;;  %v1000_v0 = vpop.permute.xlu1 %999  ;;  %v854_v58 = vadd.f32 %v831_v19, %v748_v40  ;;  %v1086_v12 = vsel %vm1063_vm7, %v2321_v18, %v2352_v36  ;;  %v832_v3 = vsel %vm826_vm6, %v2277_v43, %v2275_v28 }
 0x1ef   : > { %v1017_v1 = vsel %vm826_vm6, %v1000_v0, %v1002_v60  ;;  %v1037_v8 = vadd.f32 %v1000_v0, %v952_v51  ;;  %1134 = vrot.lane.b32.xlu1 %v1108_v29, %s1535_s21  ;;  %v956_v42 = vadd.f32 %v2294_v34, %v853_v6  ;;  %v1089_v31 = vsel %vm1063_vm7, %v2325_v30, %v1088_v63 }
 0x1f0   : > { %v1038_v44 = vadd.f32 %v1017_v1, %v953_v17  ;;  %1136 = vrot.lane.b32.xlu0 %v1109_v53, %s1535_s21  ;;  %v957_v20 = vadd.f32 %v934_v52, %v854_v58  ;;  %v1090_v26 = vrot.slane %v751_v4, 4  ;;  %v1092_v46 = vrot.slane %v752_v57, 4 }
 0x1f1   : > { %v1110_v38 = vadd.f32 %v1076_v45, %v1037_v8  ;;  %v1006_v21 = vpop.permute.xlu0 %1005  ;;  %v855_v18 = vadd.f32 %v2277_v43, %v749_v9  ;;  %v935_v28 = vsel %vm826_vm6, %v2306_v50, %v2303_v16  ;;  %v856_v30 = vadd.f32 %v832_v3, %v750_v15 }
 0x1f2   : > { %v1111_v13 = vadd.f32 %v1079_v11, %v1038_v44  ;;  %v1004_v56 = vpop.permute.xlu1 %1003  ;;  %v1091_v16 = vsel %vm1063_vm7, %v2352_v36, %v1090_v26  ;;  %v1093_v22 = vsel %vm1063_vm7, %v1088_v63, %v1092_v46 }
 0x1f3   : > { %v1018_v59 = vsel %vm826_vm6, %v1004_v56, %v1006_v21  ;;  %v1039_v7 = vadd.f32 %v1004_v56, %v954_v35  ;;  %1138 = vrot.lane.b32.xlu1 %v1110_v38, %s1535_s21  ;;  %v958_v37 = vadd.f32 %v2306_v50, %v855_v18  ;;  %v959_v43 = vadd.f32 %v935_v28, %v856_v30 }
 0x1f4   : > { %v1040_v62 = vadd.f32 %v1018_v59, %v955_v54  ;;  %1140 = vrot.lane.b32.xlu0 %v1111_v13, %s1535_s21 }
 0x1f5   : > { %v1112_v55 = vadd.f32 %v1081_v24, %v1039_v7  ;;  %v1010_v23 = vpop.permute.xlu0 %1009 }
 0x1f6   : > { %v1113_v40 = vadd.f32 %v1083_v33, %v1040_v62  ;;  %v1008_v2 = vpop.permute.xlu1 %1007 }
 0x1f7   : > { %v1019_v34 = vsel %vm826_vm6, %v1008_v2, %v1010_v23  ;;  %v1041_v5 = vadd.f32 %v1008_v2, %v956_v42  ;;  %1142 = vrot.lane.b32.xlu1 %v1112_v55, %s1535_s21 }
 0x1f8   : > { %v1042_v14 = vadd.f32 %v1019_v34, %v957_v20  ;;  %1144 = vrot.lane.b32.xlu0 %v1113_v40, %s1535_s21 }
 0x1f9   : > { %v1114_v47 = vadd.f32 %v1086_v12, %v1041_v5  ;;  %v1014_v27 = vpop.permute.xlu0 %1013 }
 0x1fa   : > { %v1115_v9 = vadd.f32 %v1089_v31, %v1042_v14  ;;  %v1012_v49 = vpop.permute.xlu1 %1011 }
 0x1fb   : > { %v1020_v51 = vsel %vm826_vm6, %v1012_v49, %v1014_v27  ;;  %v1043_v25 = vadd.f32 %v1012_v49, %v958_v37  ;;  %1146 = vrot.lane.b32.xlu1 %v1114_v47, %s1535_s21 }
 0x1fc   : > { %v1044_v15 = vadd.f32 %v1020_v51, %v959_v43  ;;  %1148 = vrot.lane.b32.xlu0 %v1115_v9, %s1535_s21 }
 0x1fd   : > { %v1116_v50 = vadd.f32 %v1091_v16, %v1043_v25 }
 0x1fe   : > { %v1117_v29 = vadd.f32 %v1093_v22, %v1044_v15 }
 0x1ff   : > { %1150 = vrot.lane.b32.xlu1 %v1116_v50, %s1535_s21 }
 0x200   : > { %1152 = vrot.lane.b32.xlu0 %v1117_v29, %s1535_s21 }
 0x25d   : > { %v1131_v60 = vpop.permute.xlu1 %1130 }
 0x25e   : > { %v1133_v10 = vpop.permute.xlu0 %1132 }
 0x25f   : > { %v1154_v36 = vsel %vm427_vm1, %v1131_v60, %v1133_v10 }
 0x260   : > { %1166 = vst [vmem:[%s263_s29] sm:$0xff] %v1154_v36 }
 0x261   : > { %v1135_v17 = vpop.permute.xlu1 %1134 }
 0x262   : > { %v1137_v53 = vpop.permute.xlu0 %1136 }
 0x263   : > { %v1155_v45 = vsel %vm427_vm1, %v1135_v17, %v1137_v53 }
 0x264   : > { %1167 = vst [vmem:[%s263_s29 + $0x8] sm:$0xff] %v1155_v45 }
 0x265   : > { %v1139_v11 = vpop.permute.xlu1 %1138 }
 0x266   : > { %v1141_v0 = vpop.permute.xlu0 %1140 }
 0x267   : > { %v1156_v41 = vsel %vm427_vm1, %v1139_v11, %v1141_v0 }
 0x268   : > { %1168 = vst [vmem:[%s263_s29 + $0x10] sm:$0xff] %v1156_v41 }
 0x269   : > { %v1143_v48 = vpop.permute.xlu1 %1142 }
 0x26a   : > { %v1145_v1 = vpop.permute.xlu0 %1144 }
 0x26b   : > { %v1157_v8 = vsel %vm427_vm1, %v1143_v48, %v1145_v1 }
 0x26c   : > { %1169 = vst [vmem:[%s263_s29 + $0x18] sm:$0xff] %v1157_v8 }
 0x26d   : > { %v1147_v32 = vpop.permute.xlu1 %1146 }
 0x26e   : > { %v1149_v63 = vpop.permute.xlu0 %1148 }
 0x26f   : > { %v1158_v44 = vsel %vm427_vm1, %v1147_v32, %v1149_v63 }
 0x270   : > { %1170 = vst [vmem:[%s263_s29 + $0x20] sm:$0xff] %v1158_v44 }
 0x271   : > { %v1151_v24 = vpop.permute.xlu1 %1150 }
 0x272   : > { %v1153_v19 = vpop.permute.xlu0 %1152 }
 0x273   : > { %v1159_v35 = vsel %vm427_vm1, %v1151_v24, %v1153_v19 }
 0x274   : > { %1171 = vst [vmem:[%s263_s29 + $0x28] sm:$0xff] %v1159_v35 }
 0x275   : > { %1449 = shalt.err (!%p1446_p13)
}
 0x276   : > { %s1450_s19 = scalar_lea.hbm %s2440_s16, 768  ;;  %s1454_s5 = scalar_lea.hbm %s2492_s2, 1536 }
 0x277   : > { %p1451_p0 = scmp.ne.s32.totalorder %s2440_s16, %s1450_s19  ;;  %p1455_p1 = scmp.lt.u32.totalorder %s2440_s16, %s2492_s2 }
 0x278   : > { %p1456_p5 = scmp.lt.u32.totalorder %s1454_s5, %s1450_s19  ;;  %p1458_p4 = scmp.lt.u32.totalorder %s1450_s19, %s2440_s16 }
 0x279   : > { %p1452_p2 = pnand %p1451_p0, %p2558_p8 }
 0x27a   : > { %p1457_p6 = por %p1456_p5, %p1455_p1 }
 0x27b   : > { %p1453_p3 = pneg %p1452_p2 }
 0x27c   : > { %p1459_p9 = por %p1458_p4, %p1457_p6 }
 0x27e   : > { %p1460_p11 = pnand %p1459_p9, %p1453_p3 }
 0x280   : > { %1463 = shalt.err (!%p1460_p11)
}
 0x281   : > { %s1539_s27 = smov 128   ;;  %s1540_s29 = smov 8  }
 0x282   : > { %1331 = dma.vmem_to_hbm [thread:$0]  (%p2558_p8), %s2435_s30, 768, %s2440_s16, %s1173_s12, %s1539_s27, %s1539_s27, %s1540_s29  }
 0x283 PF: > { %s1203_s3 = sand.u32 1, %s1502_s9   ;;  %p2559_p12 = scmp.ne.s32.totalorder %s2515_s24, 0 }
 0x284   : > { %p2560_p7 = scmp.ge.s32.totalorder %s1522_s14, 2  ;;  %s1204_s6 = scalar_lea.sflag [#allocation4], %s1203_s3 }
 0x286   : > { %p1334_p10 = pnand %p2560_p7, %p2559_p12 }
 0x288   : > { %1497 = dma.done.wait (!%p1334_p10), %s1204_s6, 768  }
 0x289   : > { %1499 = vsyncadd (!%p1334_p10), %s1204_s6, 4294966528  ;;  %s21_s14 = sadd.s32 1, %s1522_s14   ;;  %s2561_s9 = smov %s1506_s10 }
 0x28a   : > { %p18_p13 = scmp.ge.s32.totalorder %s21_s14, 4   ;;  %s2562_s10 = smov %s1510_s11 }
 0x28b   : > { %s2563_s11 = smov %s1612_s23  ;;  %s2564_s12 = smov %s1518_s13 }
 0x28c   : > { %s2565_s13 = smov %s2567_s17  ;;  %20 = sbr.rel (!%p18_p13) target bundleno = 8 (0x8), region = 91 }
 0x293   :  { %1209 = vsyncpa [#allocation3], 1 }
 0x294   :  { %1211 = vsyncpa [#allocation3 + $0x1], 1 }
 0x295   :  { %1212 = vsyncpa [#allocation6], 1 }
 0x296   :  { %1214 = vsyncpa [#allocation6 + $0x1], 1 }
 0x297   :  { %1215 = vsyncpa [#allocation4], 1 }
 0x298   :  { %1217 = vsyncpa [#allocation4 + $0x1], 1 }

</bundles_post_ra>
